<compile_context>
chip_gen: v5e
topology: v5e:2x2
jax: 0.10.0
libtpu: 0.0.40
codegen_flags: <defaults>
</compile_context>

<pallas_src>
import jax
import jax.numpy as jnp
from jax.experimental import pallas as pl
from jax.experimental.pallas import tpu as pltpu


def _round_up(x, m):
    return ((x + m - 1) // m) * m


# ----------------------------------------------------------------------------
# Kernel 1: tiled im2col-matmul + bias + ReLU   (conv1)
#   A tile [TM, K] (bf16)  @  W [K, C] (bf16, resident)  + b [1, C] (f32)
# ----------------------------------------------------------------------------
def _matmul_bias_relu_kernel(a_ref, w_ref, b_ref, o_ref):
    acc = jnp.dot(a_ref[...], w_ref[...], preferred_element_type=jnp.float32)
    acc = jnp.maximum(acc + b_ref[...], 0.0)
    o_ref[...] = acc.astype(o_ref.dtype)


def matmul_bias_relu(a, w, b, *, tm):
    M, K = a.shape
    Cout = w.shape[1]
    return pl.pallas_call(
        _matmul_bias_relu_kernel,
        out_shape=jax.ShapeDtypeStruct((M, Cout), jnp.bfloat16),
        grid=(M // tm,),
        in_specs=[
            pl.BlockSpec((tm, K), lambda i: (i, 0)),
            pl.BlockSpec((K, Cout), lambda i: (0, 0)),     # resident weights
            pl.BlockSpec((1, Cout), lambda i: (0, 0)),     # resident bias
        ],
        out_specs=pl.BlockSpec((tm, Cout), lambda i: (i, 0)),  # lane-dense (C=128)
        compiler_params=pltpu.CompilerParams(
            dimension_semantics=("parallel",)),
    )(a, w, b)


# ----------------------------------------------------------------------------
# Kernel 2: fused conv2 (im2col matmul + bias + ReLU) + global-avg-pool + head.
# Grid = (batch blocks [parallel], spatial M-tiles [arbitrary / reduction]).
# A VMEM accumulator carries per-sample channel sums across M-tiles; the head
# matmul + logits store happen once, on the last M-tile (lane-dense 128 cols).
# ----------------------------------------------------------------------------
def _make_conv_gap_head_kernel(nb, tm, mt, hw_true, hw_padded):
    need_mask = hw_padded != hw_true

    def kernel(a_ref, w_ref, b_ref, wh_ref, bh_ref, o_ref, acc_ref):
        m = pl.program_id(1)

        @pl.when(m == 0)
        def _():
            acc_ref[...] = jnp.zeros_like(acc_ref)

        wmat = w_ref[...]            # [K2, C2] bf16, resident
        bias = b_ref[...]            # [1, C2] f32, loaded once
        if need_mask:
            t = jax.lax.broadcasted_iota(jnp.int32, (tm, 1), 0)
            valid = (m * tm + t) < hw_true            # mask padded spatial rows

        for s in range(nb):                            # static unroll over samples
            y = jnp.dot(a_ref[s], wmat, preferred_element_type=jnp.float32)
            y = jnp.maximum(y + bias, 0.0)             # [tm, C2] f32
            if need_mask:
                y = jnp.where(valid, y, 0.0)
            part = jnp.sum(y, axis=0, keepdims=True)   # [1, C2]
            acc_ref[pl.ds(s, 1), :] = acc_ref[pl.ds(s, 1), :] + part

        @pl.when(m == mt - 1)
        def _():
            pooled = acc_ref[...] * (1.0 / hw_true)    # true-HW mean (GAP)
            logits = jnp.dot(pooled, wh_ref[...],
                             preferred_element_type=jnp.float32) + bh_ref[...]
            o_ref[...] = logits

    return kernel


def conv_gap_head(a, w2, b2, wh, bh, *, nb, tm, hw_true):
    Np, HWp, K2 = a.shape
    C2 = w2.shape[1]
    CH = wh.shape[1]
    mt = HWp // tm
    kernel = _make_conv_gap_head_kernel(nb, tm, mt, hw_true, HWp)
    return pl.pallas_call(
        kernel,
        out_shape=jax.ShapeDtypeStruct((Np, CH), jnp.float32),
        grid=(Np // nb, mt),
        in_specs=[
            pl.BlockSpec((nb, tm, K2), lambda n, m: (n, m, 0)),
            pl.BlockSpec((K2, C2), lambda n, m: (0, 0)),   # resident conv weights
            pl.BlockSpec((1, C2), lambda n, m: (0, 0)),
            pl.BlockSpec((C2, CH), lambda n, m: (0, 0)),   # resident head weights
            pl.BlockSpec((1, CH), lambda n, m: (0, 0)),
        ],
        out_specs=pl.BlockSpec((nb, CH), lambda n, m: (n, 0)),  # lane-dense logits
        scratch_shapes=[pltpu.VMEM((nb, C2), jnp.float32)],
        compiler_params=pltpu.CompilerParams(
            dimension_semantics=("parallel", "arbitrary")),
    )(a, w2, b2, wh, bh)


# ----------------------------------------------------------------------------
# JAX-side glue: im2col for 3x3 / stride 2 / pad 1 (handles odd H, W correctly)
# ----------------------------------------------------------------------------
def _im2col_3x3_s2(x):
    N, H, W, C = x.shape
    Ho = (H - 1) // 2 + 1
    Wo = (W - 1) // 2 + 1
    xp = jnp.pad(x, ((0, 0), (1, 1), (1, 1), (0, 0)))
    taps = []
    for dy in range(3):
        for dx in range(3):
            taps.append(xp[:, dy:dy + 2 * Ho - 1:2, dx:dx + 2 * Wo - 1:2, :])
    p = jnp.stack(taps, axis=3)                      # [N, Ho, Wo, 9, C]
    return p.reshape(N, Ho * Wo, 9 * C), Ho, Wo


def detector_forward(x_nchw, params):
    # x_nchw: [N, 3, H, W] (PyTorch convention) -> logits [N, 2]
    x = jnp.transpose(x_nchw, (0, 2, 3, 1)).astype(jnp.bfloat16)   # NCHW -> NHWC
    N = x.shape[0]

    # --- conv1: 3x3 s2 p1 + ReLU (tiled Pallas matmul over M) ---
    a1, Ho1, Wo1 = _im2col_3x3_s2(x)                 # [N, Ho1*Wo1, 27] bf16
    K1 = a1.shape[-1]
    K1p = params["w1"].shape[0]                      # K padded to 32
    M1 = N * Ho1 * Wo1
    a1 = a1.reshape(M1, K1)
    a1 = jnp.pad(a1, ((0, 0), (0, K1p - K1)))
    tm1 = min(2048, _round_up(M1, 8))
    M1p = _round_up(M1, tm1)
    if M1p != M1:
        a1 = jnp.pad(a1, ((0, M1p - M1), (0, 0)))
    y1 = matmul_bias_relu(a1, params["w1"], params["b1"], tm=tm1)  # [M1p, 128] bf16
    C1 = y1.shape[-1]
    y1 = y1[:M1].reshape(N, Ho1, Wo1, C1)

    # --- conv2 + GAP + linear head, fused in one Pallas kernel ---
    a2, Ho2, Wo2 = _im2col_3x3_s2(y1)                # [N, HW2, 9*128] bf16
    HW2 = Ho2 * Wo2
    tm2 = min(128, _round_up(HW2, 8))
    HW2p = _round_up(HW2, tm2)
    if HW2p != HW2:
        a2 = jnp.pad(a2, ((0, 0), (0, HW2p - HW2), (0, 0)))
    if N <= 8:
        nb, Np = N, N
    else:
        nb = 8
        Np = _round_up(N, nb)
        a2 = jnp.pad(a2, ((0, Np - N), (0, 0), (0, 0)))
    logits_p = conv_gap_head(a2, params["w2"], params["b2"],
                             params["w_head_p"], params["b_head_p"],
                             nb=nb, tm=tm2, hw_true=HW2)           # [Np, 128] f32
    return logits_p[:N, :2]                                        # [N, 2]


def init_params(key, c_in=3, c1=128, c2=128, num_classes=2, head_pad=128):
    k1, k2, k3 = jax.random.split(key, 3)
    k1_raw = 9 * c_in                                # 27
    k1p = _round_up(k1_raw, 32)                      # pad K to 32 (MXU-friendly)
    w1 = jax.random.normal(k1, (k1_raw, c1), jnp.float32) * (k1_raw ** -0.5)
    w1 = jnp.pad(w1, ((0, k1p - k1_raw), (0, 0))).astype(jnp.bfloat16)
    w2 = (jax.random.normal(k2, (9 * c1, c2), jnp.float32)
          * ((9 * c1) ** -0.5)).astype(jnp.bfloat16)
    wh = jax.random.normal(k3, (c2, num_classes), jnp.float32) * (c2 ** -0.5)
    wh_p = jnp.zeros((c2, head_pad), jnp.float32).at[:, :num_classes].set(wh)
    return {
        "w1": w1, "b1": jnp.zeros((1, c1), jnp.float32),
        "w2": w2, "b2": jnp.zeros((1, c2), jnp.float32),
        "w_head_p": wh_p, "b_head_p": jnp.zeros((1, head_pad), jnp.float32),
    }


if __name__ == "__main__":
    key = jax.random.PRNGKey(0)
    kx, kp = jax.random.split(key)
    # Small image batch consistent with the Detector's image-classifier forward.
    x = jax.random.normal(kx, (2, 3, 16, 16), jnp.float32)   # NCHW like PyTorch
    params = init_params(kp)

    fwd = jax.jit(detector_forward)
    logits = fwd(x, params)
    logits = jax.block_until_ready(logits)
    assert logits.shape == (2, 2), logits.shape
    assert bool(jnp.all(jnp.isfinite(logits)))
    print("KERNEL_OK")
</pallas_src>

<mosaic_0001>
module attributes {stable_mosaic.version = 11 : i64} {
  func.func @_matmul_bias_relu_kernel(%arg0: i32, %arg1: memref<128x32xbf16, #tpu.memory_space<vmem>>, %arg2: memref<32x128xbf16, #tpu.memory_space<vmem>>, %arg3: memref<1x128xf32, #tpu.memory_space<vmem>>, %arg4: memref<128x128xbf16, #tpu.memory_space<vmem>>) attributes {dimension_semantics = [#tpu.dimension_semantics<parallel>], iteration_bounds = array<i64: 1>, scalar_prefetch = 0 : i64, scratch_operands = 0 : i64, tpu.core_type = #tpu.core_type<tc>, window_params = [{transform_indices = @transform_0, window_bounds = array<i64: 128, 32>}, {pipeline_mode = #tpu.pipeline_mode<synchronous>, transform_indices = @transform_1, window_bounds = array<i64: 32, 128>}, {pipeline_mode = #tpu.pipeline_mode<synchronous>, transform_indices = @transform_2, window_bounds = array<i64: 1, 128>}, {transform_indices = @transform_3, window_bounds = array<i64: 128, 128>}]} {
    %c0 = arith.constant 0 : index
    %c0_0 = arith.constant 0 : index
    %0 = vector.load %arg1[%c0, %c0_0] : memref<128x32xbf16, #tpu.memory_space<vmem>>, vector<128x32xbf16>
    %c0_1 = arith.constant 0 : index
    %c0_2 = arith.constant 0 : index
    %1 = vector.load %arg2[%c0_1, %c0_2] : memref<32x128xbf16, #tpu.memory_space<vmem>>, vector<32x128xbf16>
    %cst = arith.constant dense<0.000000e+00> : vector<128x128xf32>
    %2 = tpu.matmul %0, %1, %cst {dimension_numbers = #tpu.dot_dimension_numbers<[1], [0], [0], [1], [0, 0, 1, 1], [], []>} : vector<128x32xbf16>, vector<32x128xbf16>, vector<128x128xf32> -> vector<128x128xf32>
    %c0_3 = arith.constant 0 : index
    %c0_4 = arith.constant 0 : index
    %3 = vector.load %arg3[%c0_3, %c0_4] : memref<1x128xf32, #tpu.memory_space<vmem>>, vector<1x128xf32>
    %4 = vector.broadcast %3 : vector<1x128xf32> to vector<128x128xf32>
    %5 = arith.addf %2, %4 : vector<128x128xf32>
    %cst_5 = arith.constant 0.000000e+00 : f32
    %6 = vector.broadcast %cst_5 : f32 to vector<128x128xf32>
    %7 = arith.maximumf %5, %6 : vector<128x128xf32>
    %8 = arith.truncf %7 : vector<128x128xf32> to vector<128x128xbf16>
    %c0_6 = arith.constant 0 : index
    %c0_7 = arith.constant 0 : index
    %9 = vector.load %arg4[%c0_6, %c0_7] : memref<128x128xbf16, #tpu.memory_space<vmem>>, vector<128x128xbf16>
    tpu.vector_store %arg4[%c0_6, %c0_7], %8 {strides = array<i32>} : memref<128x128xbf16, #tpu.memory_space<vmem>>, vector<128x128xbf16>,
    return
  }
  func.func @transform_0(%arg0: i32) -> (i32, i32) {
    %c0_i32 = arith.constant 0 : i32
    %c0_i32_0 = arith.constant 0 : i32
    return %arg0, %c0_i32 : i32, i32
  }
  func.func @transform_1(%arg0: i32) -> (i32, i32) {
    %c0_i32 = arith.constant 0 : i32
    %c0_i32_0 = arith.constant 0 : i32
    %c0_i32_1 = arith.constant 0 : i32
    return %c0_i32, %c0_i32_0 : i32, i32
  }
  func.func @transform_2(%arg0: i32) -> (i32, i32) {
    %c0_i32 = arith.constant 0 : i32
    %c0_i32_0 = arith.constant 0 : i32
    %c0_i32_1 = arith.constant 0 : i32
    return %c0_i32, %c0_i32_0 : i32, i32
  }
  func.func @transform_3(%arg0: i32) -> (i32, i32) {
    %c0_i32 = arith.constant 0 : i32
    %c0_i32_0 = arith.constant 0 : i32
    return %arg0, %c0_i32 : i32, i32
  }
}

module attributes {stable_mosaic.version = 11 : i64} {
  func.func @kernel(%arg0: i32, %arg1: i32, %arg2: memref<2x16x1152xbf16, #tpu.memory_space<vmem>>, %arg3: memref<1152x128xbf16, #tpu.memory_space<vmem>>, %arg4: memref<1x128xf32, #tpu.memory_space<vmem>>, %arg5: memref<128x128xf32, #tpu.memory_space<vmem>>, %arg6: memref<1x128xf32, #tpu.memory_space<vmem>>, %arg7: memref<2x128xf32, #tpu.memory_space<vmem>>, %arg8: memref<2x128xf32, #tpu.memory_space<vmem>>) attributes {dimension_semantics = [#tpu.dimension_semantics<parallel>, #tpu.dimension_semantics<arbitrary>], iteration_bounds = array<i64: 1, 1>, scalar_prefetch = 0 : i64, scratch_operands = 1 : i64, tpu.core_type = #tpu.core_type<tc>, window_params = [{transform_indices = @transform_0, window_bounds = array<i64: 2, 16, 1152>}, {pipeline_mode = #tpu.pipeline_mode<synchronous>, transform_indices = @transform_1, window_bounds = array<i64: 1152, 128>}, {pipeline_mode = #tpu.pipeline_mode<synchronous>, transform_indices = @transform_2, window_bounds = array<i64: 1, 128>}, {pipeline_mode = #tpu.pipeline_mode<synchronous>, transform_indices = @transform_3, window_bounds = array<i64: 128, 128>}, {pipeline_mode = #tpu.pipeline_mode<synchronous>, transform_indices = @transform_4, window_bounds = array<i64: 1, 128>}, {transform_indices = @transform_5, window_bounds = array<i64: 2, 128>}]} {
    %c0_i32 = arith.constant 0 : i32
    %0 = arith.cmpi eq, %arg1, %c0_i32 : i32
    %1 = arith.extui %0 : i1 to i32
    %c0_i32_0 = arith.constant 0 : i32
    %2 = arith.cmpi ne, %1, %c0_i32_0 : i32
    scf.if %2 {
      %cst_24 = arith.constant 0.000000e+00 : f32
      %32 = vector.broadcast %cst_24 : f32 to vector<2x128xf32>
      %c0_25 = arith.constant 0 : index
      %c0_26 = arith.constant 0 : index
      %33 = vector.load %arg8[%c0_25, %c0_26] : memref<2x128xf32, #tpu.memory_space<vmem>>, vector<2x128xf32>
      tpu.vector_store %arg8[%c0_25, %c0_26], %32 {strides = array<i32>} : memref<2x128xf32, #tpu.memory_space<vmem>>, vector<2x128xf32>,
    } else {
    }
    %c0 = arith.constant 0 : index
    %c0_1 = arith.constant 0 : index
    %3 = vector.load %arg3[%c0, %c0_1] : memref<1152x128xbf16, #tpu.memory_space<vmem>>, vector<1152x128xbf16>
    %c0_2 = arith.constant 0 : index
    %c0_3 = arith.constant 0 : index
    %4 = vector.load %arg4[%c0_2, %c0_3] : memref<1x128xf32, #tpu.memory_space<vmem>>, vector<1x128xf32>
    %c0_4 = arith.constant 0 : index
    %c0_5 = arith.constant 0 : index
    %c0_6 = arith.constant 0 : index
    %5 = vector.load %arg2[%c0_4, %c0_5, %c0_6] : memref<2x16x1152xbf16, #tpu.memory_space<vmem>>, vector<1x16x1152xbf16>
    %6 = vector.shape_cast %5 : vector<1x16x1152xbf16> to vector<16x1152xbf16>
    %cst = arith.constant dense<0.000000e+00> : vector<16x128xf32>
    %7 = tpu.matmul %6, %3, %cst {dimension_numbers = #tpu.dot_dimension_numbers<[1], [0], [0], [1], [0, 0, 1, 1], [], []>} : vector<16x1152xbf16>, vector<1152x128xbf16>, vector<16x128xf32> -> vector<16x128xf32>
    %8 = vector.broadcast %4 : vector<1x128xf32> to vector<16x128xf32>
    %9 = arith.addf %7, %8 : vector<16x128xf32>
    %cst_7 = arith.constant 0.000000e+00 : f32
    %10 = vector.broadcast %cst_7 : f32 to vector<16x128xf32>
    %11 = arith.maximumf %9, %10 : vector<16x128xf32>
    %cst_8 = arith.constant dense<0.000000e+00> : vector<128xf32>
    %12 = vector.multi_reduction <add>, %11, %cst_8 [0] : vector<16x128xf32> to vector<128xf32>
    %13 = vector.shape_cast %12 : vector<128xf32> to vector<1x128xf32>
    %c0_9 = arith.constant 0 : index
    %c0_10 = arith.constant 0 : index
    %14 = vector.load %arg8[%c0_9, %c0_10] : memref<2x128xf32, #tpu.memory_space<vmem>>, vector<1x128xf32>
    %15 = arith.addf %14, %13 : vector<1x128xf32>
    %c0_11 = arith.constant 0 : index
    %c0_12 = arith.constant 0 : index
    %16 = vector.load %arg8[%c0_11, %c0_12] : memref<2x128xf32, #tpu.memory_space<vmem>>, vector<1x128xf32>
    tpu.vector_store %arg8[%c0_11, %c0_12], %15 {strides = array<i32>} : memref<2x128xf32, #tpu.memory_space<vmem>>, vector<1x128xf32>,
    %c1 = arith.constant 1 : index
    %c0_13 = arith.constant 0 : index
    %c0_14 = arith.constant 0 : index
    %17 = vector.load %arg2[%c1, %c0_13, %c0_14] : memref<2x16x1152xbf16, #tpu.memory_space<vmem>>, vector<1x16x1152xbf16>
    %18 = vector.shape_cast %17 : vector<1x16x1152xbf16> to vector<16x1152xbf16>
    %cst_15 = arith.constant dense<0.000000e+00> : vector<16x128xf32>
    %19 = tpu.matmul %18, %3, %cst_15 {dimension_numbers = #tpu.dot_dimension_numbers<[1], [0], [0], [1], [0, 0, 1, 1], [], []>} : vector<16x1152xbf16>, vector<1152x128xbf16>, vector<16x128xf32> -> vector<16x128xf32>
    %20 = vector.broadcast %4 : vector<1x128xf32> to vector<16x128xf32>
    %21 = arith.addf %19, %20 : vector<16x128xf32>
    %cst_16 = arith.constant 0.000000e+00 : f32
    %22 = vector.broadcast %cst_16 : f32 to vector<16x128xf32>
    %23 = arith.maximumf %21, %22 : vector<16x128xf32>
    %cst_17 = arith.constant dense<0.000000e+00> : vector<128xf32>
    %24 = vector.multi_reduction <add>, %23, %cst_17 [0] : vector<16x128xf32> to vector<128xf32>
    %25 = vector.shape_cast %24 : vector<128xf32> to vector<1x128xf32>
    %c1_18 = arith.constant 1 : index
    %c0_19 = arith.constant 0 : index
    %26 = vector.load %arg8[%c1_18, %c0_19] : memref<2x128xf32, #tpu.memory_space<vmem>>, vector<1x128xf32>
    %27 = arith.addf %26, %25 : vector<1x128xf32>
    %c1_20 = arith.constant 1 : index
    %c0_21 = arith.constant 0 : index
    %28 = vector.load %arg8[%c1_20, %c0_21] : memref<2x128xf32, #tpu.memory_space<vmem>>, vector<1x128xf32>
    tpu.vector_store %arg8[%c1_20, %c0_21], %27 {strides = array<i32>} : memref<2x128xf32, #tpu.memory_space<vmem>>, vector<1x128xf32>,
    %c0_i32_22 = arith.constant 0 : i32
    %29 = arith.cmpi eq, %arg1, %c0_i32_22 : i32
    %30 = arith.extui %29 : i1 to i32
    %c0_i32_23 = arith.constant 0 : i32
    %31 = arith.cmpi ne, %30, %c0_i32_23 : i32
    scf.if %31 {
      %c0_24 = arith.constant 0 : index
      %c0_25 = arith.constant 0 : index
      %32 = vector.load %arg8[%c0_24, %c0_25] : memref<2x128xf32, #tpu.memory_space<vmem>>, vector<2x128xf32>
      %cst_26 = arith.constant 6.250000e-02 : f32
      %33 = vector.broadcast %cst_26 : f32 to vector<2x128xf32>
      %34 = arith.mulf %32, %33 : vector<2x128xf32>
      %c0_27 = arith.constant 0 : index
      %c0_28 = arith.constant 0 : index
      %35 = vector.load %arg5[%c0_27, %c0_28] : memref<128x128xf32, #tpu.memory_space<vmem>>, vector<128x128xf32>
      %cst_29 = arith.constant dense<0.000000e+00> : vector<2x128xf32>
      %36 = tpu.matmul %34, %35, %cst_29 {dimension_numbers = #tpu.dot_dimension_numbers<[1], [0], [0], [1], [0, 0, 1, 1], [], []>} : vector<2x128xf32>, vector<128x128xf32>, vector<2x128xf32> -> vector<2x128xf32>
      %c0_30 = arith.constant 0 : index
      %c0_31 = arith.constant 0 : index
      %37 = vector.load %arg6[%c0_30, %c0_31] : memref<1x128xf32, #tpu.memory_space<vmem>>, vector<1x128xf32>
      %38 = vector.broadcast %37 : vector<1x128xf32> to vector<2x128xf32>
      %39 = arith.addf %36, %38 : vector<2x128xf32>
      %c0_32 = arith.constant 0 : index
      %c0_33 = arith.constant 0 : index
      %40 = vector.load %arg7[%c0_32, %c0_33] : memref<2x128xf32, #tpu.memory_space<vmem>>, vector<2x128xf32>
      tpu.vector_store %arg7[%c0_32, %c0_33], %39 {strides = array<i32>} : memref<2x128xf32, #tpu.memory_space<vmem>>, vector<2x128xf32>,
    } else {
    }
    return
  }
  func.func @transform_0(%arg0: i32, %arg1: i32) -> (i32, i32, i32) {
    %c0_i32 = arith.constant 0 : i32
    %c0_i32_0 = arith.constant 0 : i32
    return %arg0, %arg1, %c0_i32 : i32, i32, i32
  }
  func.func @transform_1(%arg0: i32, %arg1: i32) -> (i32, i32) {
    %c0_i32 = arith.constant 0 : i32
    %c0_i32_0 = arith.constant 0 : i32
    %c0_i32_1 = arith.constant 0 : i32
    return %c0_i32, %c0_i32_0 : i32, i32
  }
  func.func @transform_2(%arg0: i32, %arg1: i32) -> (i32, i32) {
    %c0_i32 = arith.constant 0 : i32
    %c0_i32_0 = arith.constant 0 : i32
    %c0_i32_1 = arith.constant 0 : i32
    return %c0_i32, %c0_i32_0 : i32, i32
  }
  func.func @transform_3(%arg0: i32, %arg1: i32) -> (i32, i32) {
    %c0_i32 = arith.constant 0 : i32
    %c0_i32_0 = arith.constant 0 : i32
    %c0_i32_1 = arith.constant 0 : i32
    return %c0_i32, %c0_i32_0 : i32, i32
  }
  func.func @transform_4(%arg0: i32, %arg1: i32) -> (i32, i32) {
    %c0_i32 = arith.constant 0 : i32
    %c0_i32_0 = arith.constant 0 : i32
    %c0_i32_1 = arith.constant 0 : i32
    return %c0_i32, %c0_i32_0 : i32, i32
  }
  func.func @transform_5(%arg0: i32, %arg1: i32) -> (i32, i32) {
    %c0_i32 = arith.constant 0 : i32
    %c0_i32_0 = arith.constant 0 : i32
    return %arg0, %c0_i32 : i32, i32
  }
}

</mosaic_0001>

<bundles_post_ra>
// kernel: detector_forward.2
= control target key start
LH: loop header
LB: loop body
LE: loop exit
PB: predicated region body
PF: predicated region fallthrough
CT: control target
= control target key end

     0   :  { %vm91_vm0 = vcmask 261120   ;;  %s414_s1 = inlined_call_operand.vmem [shape: bf16[32,128], index: 1, kind: input, shape index: {}]   ;;  %s415_s0 = inlined_call_operand.vmem [shape: bf16[128,32], index: 0, kind: input, shape index: {}]   ;;  %s416_s2 = inlined_call_operand.vmem [shape: f32[1,128], index: 2, kind: input, shape index: {}]   ;;  %s417_s3 = inlined_call_operand.vmem [shape: bf16[128,128], index: 3, kind: output, shape index: {}]  }
   0x1   :  { %v274_v0 = vld [vmem:[%s414_s1 + $0x8] sm:$0xff]  ;;  %v273_v1 = vld [vmem:[%s414_s1] sm:$0xff]  ;;  %v267_v3 = vld [vmem:[%s415_s0 + $0x10] sm:$0xff] }
   0x2   :  { %122 = vmatpush.bf16.msra.mxu0 %v274_v0  ;;  %322 = vmatpush.bf16.msra.mxu1 %v274_v0  ;;  %v265_v2 = vld [vmem:[%s415_s0] sm:$0xff]  ;;  %v271_v5 = vld [vmem:[%s415_s0 + $0x30] sm:$0xff]  ;;  %v266_v6 = vld [vmem:[%s415_s0 + $0x8] sm:$0xff] }
   0x3   :  { %323 = vmatpush.bf16.msra.mxu2 %v274_v0  ;;  %324 = vmatpush.bf16.msra.mxu3 %v274_v0  ;;  %v269_v4 = vld [vmem:[%s415_s0 + $0x20] sm:$0xff]  ;;  %v268_v7 = vld [vmem:[%s415_s0 + $0x18] sm:$0xff]  ;;  %v270_v8 = vld [vmem:[%s415_s0 + $0x28] sm:$0xff] }
   0x4   :  { %v272_v9 = vld [vmem:[%s415_s0 + $0x38] sm:$0xff]  ;;  %v328_v12 = vld [vmem:[%s416_s2] ss:$0 sm:$0xff] }
   0x6   :  { %123 = vmatpush.bf16.msra.mxu0 %v273_v1  ;;  %325 = vmatpush.bf16.msra.mxu1 %v273_v1 }
   0x7   :  { %326 = vmatpush.bf16.msra.mxu2 %v273_v1  ;;  %327 = vmatpush.bf16.msra.mxu3 %v273_v1 }
   0x9   :  { %257 = vmatmul.msk.bf16.vlgmr.msra.gmra.mxu0 %vm91_vm0, %v265_v2  ;;  %259 = vmatmul.msk.bf16.vlgmr.msra.gmra.mxu1 %vm91_vm0, %v267_v3 }
   0xa   :  { %261 = vmatmul.msk.bf16.vlgmr.msra.gmra.mxu2 %vm91_vm0, %v269_v4  ;;  %263 = vmatmul.msk.bf16.vlgmr.msra.gmra.mxu3 %vm91_vm0, %v271_v5 }
  0x19   :  { %258 = vmatmul.msk.bf16.gmra.mxu0 %vm91_vm0, %v266_v6  ;;  %260 = vmatmul.msk.bf16.gmra.mxu1 %vm91_vm0, %v268_v7 }
  0x1a   :  { %262 = vmatmul.msk.bf16.gmra.mxu2 %vm91_vm0, %v270_v8  ;;  %264 = vmatmul.msk.bf16.gmra.mxu3 %vm91_vm0, %v272_v9 }
  0x86   :  { %v125_v10 = vpop.f32.mrf.mxu0  ;;  %v135_v11 = vpop.f32.mrf.mxu1 }
  0x87   :  { %v126_v13 = vadd.f32 %v328_v12, %v125_v10  ;;  %v136_v14 = vadd.f32 %v328_v12, %v135_v11 }
  0x89   :  { %v165_v21 = vmax.f32 %v126_v13, 0.0  ;;  %v169_v22 = vmax.f32 %v136_v14, 0.0 }
  0x8d   :  { %v145_v15 = vpop.f32.mrf.mxu2  ;;  %v155_v16 = vpop.f32.mrf.mxu3 }
  0x8e   :  { %v127_v17 = vpop.f32.mrf.mxu0  ;;  %v137_v18 = vpop.f32.mrf.mxu1  ;;  %v146_v27 = vadd.f32 %v328_v12, %v145_v15  ;;  %v156_v28 = vadd.f32 %v328_v12, %v155_v16 }
  0x8f   :  { %v128_v19 = vadd.f32 %v328_v12, %v127_v17  ;;  %v138_v20 = vadd.f32 %v328_v12, %v137_v18 }
  0x90   :  { %v173_v35 = vmax.f32 %v146_v27, 0.0  ;;  %v177_v36 = vmax.f32 %v156_v28, 0.0 }
  0x91   :  { %v166_v23 = vmax.f32 %v128_v19, 0.0  ;;  %v170_v24 = vmax.f32 %v138_v20, 0.0 }
  0x93   :  { %v278_v25 = vpack.c.bf16 %v166_v23, %v165_v21  ;;  %v288_v26 = vpack.c.bf16 %v170_v24, %v169_v22 }
  0x95   :  { %279 = vst [vmem:[%s417_s3] sm:$0xff] %v278_v25   ;;  %v147_v29 = vpop.f32.mrf.mxu2  ;;  %v157_v30 = vpop.f32.mrf.mxu3 }
  0x96   :  { %316 = vst [vmem:[%s417_s3 + $0x10] sm:$0xff] %v288_v26   ;;  %v148_v31 = vadd.f32 %v328_v12, %v147_v29  ;;  %v158_v32 = vadd.f32 %v328_v12, %v157_v30  ;;  %v130_v33 = vpop.f32.mrf.mxu0  ;;  %v140_v34 = vpop.f32.mrf.mxu1 }
  0x97   :  { %v131_v41 = vadd.f32 %v328_v12, %v130_v33  ;;  %v141_v42 = vadd.f32 %v328_v12, %v140_v34 }
  0x98   :  { %v174_v37 = vmax.f32 %v148_v31, 0.0  ;;  %v178_v38 = vmax.f32 %v158_v32, 0.0 }
  0x99   :  { %v167_v49 = vmax.f32 %v131_v41, 0.0  ;;  %v171_v50 = vmax.f32 %v141_v42, 0.0 }
  0x9a   :  { %v298_v39 = vpack.c.bf16 %v174_v37, %v173_v35  ;;  %v308_v40 = vpack.c.bf16 %v178_v38, %v177_v36 }
  0x9c   :  { %318 = vst [vmem:[%s417_s3 + $0x20] sm:$0xff] %v298_v39  }
  0x9d   :  { %320 = vst [vmem:[%s417_s3 + $0x30] sm:$0xff] %v308_v40   ;;  %v150_v43 = vpop.f32.mrf.mxu2  ;;  %v160_v44 = vpop.f32.mrf.mxu3 }
  0x9e   :  { %v132_v45 = vpop.f32.mrf.mxu0  ;;  %v142_v46 = vpop.f32.mrf.mxu1  ;;  %v151_v55 = vadd.f32 %v328_v12, %v150_v43  ;;  %v161_v56 = vadd.f32 %v328_v12, %v160_v44 }
  0x9f   :  { %v133_v47 = vadd.f32 %v328_v12, %v132_v45  ;;  %v143_v48 = vadd.f32 %v328_v12, %v142_v46 }
  0xa0   :  { %v175_v61 = vmax.f32 %v151_v55, 0.0  ;;  %v179_v62 = vmax.f32 %v161_v56, 0.0 }
  0xa1   :  { %v168_v51 = vmax.f32 %v133_v47, 0.0  ;;  %v172_v52 = vmax.f32 %v143_v48, 0.0 }
  0xa3   :  { %v283_v53 = vpack.c.bf16 %v168_v51, %v167_v49  ;;  %v293_v54 = vpack.c.bf16 %v172_v52, %v171_v50 }
  0xa5   :  { %315 = vst [vmem:[%s417_s3 + $0x8] sm:$0xff] %v283_v53   ;;  %v152_v57 = vpop.f32.mrf.mxu2  ;;  %v162_v58 = vpop.f32.mrf.mxu3 }
  0xa6   :  { %317 = vst [vmem:[%s417_s3 + $0x18] sm:$0xff] %v293_v54   ;;  %v153_v59 = vadd.f32 %v328_v12, %v152_v57  ;;  %v163_v60 = vadd.f32 %v328_v12, %v162_v58 }
  0xa8   :  { %v176_v63 = vmax.f32 %v153_v59, 0.0  ;;  %v180_v0 = vmax.f32 %v163_v60, 0.0 }
  0xaa   :  { %v303_v1 = vpack.c.bf16 %v176_v63, %v175_v61  ;;  %v313_v2 = vpack.c.bf16 %v180_v0, %v179_v62 }
  0xac   :  { %319 = vst [vmem:[%s417_s3 + $0x28] sm:$0xff] %v303_v1  }
  0xad   :  { %321 = vst [vmem:[%s417_s3 + $0x38] sm:$0xff] %v313_v2  }

// kernel: detector_forward.3
= control target key start
LH: loop header
LB: loop body
LE: loop exit
PB: predicated region body
PF: predicated region fallthrough
CT: control target
= control target key end

     0   :  { %s2254_s0 = inlined_call_operand.vmem [shape: bf16[2,16,1152], index: 0, kind: input, shape index: {}]   ;;  %s2255_s1 = inlined_call_operand.vmem [shape: bf16[1152,128], index: 1, kind: input, shape index: {}]   ;;  %s2256_s2 = inlined_call_operand.vmem [shape: f32[1,128], index: 2, kind: input, shape index: {}]   ;;  %s2257_s3 = inlined_call_operand.vmem [shape: f32[128,128], index: 3, kind: input, shape index: {}]   ;;  %s2258_s4 = inlined_call_operand.vmem [shape: f32[1,128], index: 4, kind: input, shape index: {}]   ;;  %s2259_s5 = inlined_call_operand.hbm [shape: f32[2,128], index: 5, kind: output, shape index: {}]  }
   0x1   :  { %v1582_v0 = vld [vmem:[%s2255_s1 + $0x38] sm:$0xff]  ;;  %v1604_v4 = vld [vmem:[%s2255_s1 + $0x30] sm:$0xff]  ;;  %v1628_v8 = vld [vmem:[%s2255_s1 + $0x28] sm:$0xff] }
   0x2   :  { %v1587_v1 = vld [vmem:[%s2255_s1 + $0x78] sm:$0xff]  ;;  %662 = vmatpush.bf16.msra.mxu0 %v1582_v0  ;;  %v1609_v5 = vld [vmem:[%s2255_s1 + $0x70] sm:$0xff]  ;;  %v1633_v9 = vld [vmem:[%s2255_s1 + $0x68] sm:$0xff] }
   0x3   :  { %v1592_v2 = vld [vmem:[%s2255_s1 + $0xb8] sm:$0xff]  ;;  %676 = vmatpush.bf16.msra.mxu1 %v1587_v1  ;;  %v1616_v6 = vld [vmem:[%s2255_s1 + $0xb0] sm:$0xff]  ;;  %v1640_v10 = vld [vmem:[%s2255_s1 + $0xa8] sm:$0xff] }
   0x4   :  { %v1597_v3 = vld [vmem:[%s2255_s1 + $0xf8] sm:$0xff]  ;;  %690 = vmatpush.bf16.msra.mxu2 %v1592_v2  ;;  %v1621_v7 = vld [vmem:[%s2255_s1 + $0xf0] sm:$0xff]  ;;  %v1645_v11 = vld [vmem:[%s2255_s1 + $0xe8] sm:$0xff] }
   0x5   :  { %704 = vmatpush.bf16.msra.mxu3 %v1597_v3  ;;  %v1652_v12 = vld [vmem:[%s2255_s1 + $0x20] sm:$0xff]  ;;  %v1676_v16 = vld [vmem:[%s2255_s1 + $0x18] sm:$0xff]  ;;  %v1700_v20 = vld [vmem:[%s2255_s1 + $0x10] sm:$0xff] }
   0x6   :  { %663 = vmatpush.bf16.msra.mxu0 %v1604_v4  ;;  %v1657_v13 = vld [vmem:[%s2255_s1 + $0x60] sm:$0xff]  ;;  %v1681_v17 = vld [vmem:[%s2255_s1 + $0x58] sm:$0xff]  ;;  %v1705_v21 = vld [vmem:[%s2255_s1 + $0x50] sm:$0xff] }
   0x7   :  { %677 = vmatpush.bf16.msra.mxu1 %v1609_v5  ;;  %v1664_v14 = vld [vmem:[%s2255_s1 + $0xa0] sm:$0xff]  ;;  %v1688_v18 = vld [vmem:[%s2255_s1 + $0x98] sm:$0xff]  ;;  %v1712_v22 = vld [vmem:[%s2255_s1 + $0x90] sm:$0xff] }
   0x8   :  { %691 = vmatpush.bf16.msra.mxu2 %v1616_v6  ;;  %v1669_v15 = vld [vmem:[%s2255_s1 + $0xe0] sm:$0xff]  ;;  %v1693_v19 = vld [vmem:[%s2255_s1 + $0xd8] sm:$0xff]  ;;  %v1717_v23 = vld [vmem:[%s2255_s1 + $0xd0] sm:$0xff] }
   0x9   :  { %705 = vmatpush.bf16.msra.mxu3 %v1621_v7  ;;  %v1724_v24 = vld [vmem:[%s2255_s1 + $0x8] sm:$0xff] }
   0xa   :  { %664 = vmatpush.bf16.msra.mxu0 %v1628_v8  ;;  %v1729_v25 = vld [vmem:[%s2255_s1 + $0x48] sm:$0xff] }
   0xb   :  { %678 = vmatpush.bf16.msra.mxu1 %v1633_v9  ;;  %v1736_v26 = vld [vmem:[%s2255_s1 + $0x88] sm:$0xff] }
   0xc   :  { %692 = vmatpush.bf16.msra.mxu2 %v1640_v10  ;;  %v1741_v27 = vld [vmem:[%s2255_s1 + $0xc8] sm:$0xff] }
   0xd   :  { %706 = vmatpush.bf16.msra.mxu3 %v1645_v11  ;;  %2274 = vst [vmem:[#allocation6_spill] sm:$0xff] %v1741_v27 }
   0xe   :  { %665 = vmatpush.bf16.msra.mxu0 %v1652_v12 }
   0xf   :  { %679 = vmatpush.bf16.msra.mxu1 %v1657_v13 }
  0x10   :  { %693 = vmatpush.bf16.msra.mxu2 %v1664_v14 }
  0x11   :  { %707 = vmatpush.bf16.msra.mxu3 %v1669_v15 }
  0x12   :  { %666 = vmatpush.bf16.msra.mxu0 %v1676_v16 }
  0x13   :  { %680 = vmatpush.bf16.msra.mxu1 %v1681_v17 }
  0x14   :  { %694 = vmatpush.bf16.msra.mxu2 %v1688_v18 }
  0x15   :  { %708 = vmatpush.bf16.msra.mxu3 %v1693_v19 }
  0x16   :  { %667 = vmatpush.bf16.msra.mxu0 %v1700_v20 }
  0x17   :  { %681 = vmatpush.bf16.msra.mxu1 %v1705_v21 }
  0x18   :  { %695 = vmatpush.bf16.msra.mxu2 %v1712_v22 }
  0x19   :  { %709 = vmatpush.bf16.msra.mxu3 %v1717_v23 }
  0x1a   :  { %10 = vsyncpa [#allocation4], 0  ;;  %v1746_v28 = vld [vmem:[%s2255_s1] sm:$0xff]  ;;  %668 = vmatpush.bf16.msra.mxu0 %v1724_v24  ;;  %v1763_v31 = vld [vmem:[%s2255_s1 + $0x138] sm:$0xff]  ;;  %s1548_s12 = smov [#allocation3]   ;;  %s1048_s16 = sshll.u32 %s2259_s5, 4  ;;  %s1049_s16 = int_to_ptr.hbm [resolvable:$true] %s1048_s16 }
  0x1b   :  { %v1751_v29 = vld [vmem:[%s2255_s1 + $0x40] sm:$0xff]  ;;  %682 = vmatpush.bf16.msra.mxu1 %v1729_v25  ;;  %v1776_v34 = vld [vmem:[%s2255_s1 + $0x178] sm:$0xff]  ;;  %v1067_v35 = vld [vmem:[%s2254_s0 + $0x8] sm:$0xf]  ;;  %s1046_s13 = sshll.u32 %s1548_s12, 4  ;;  %s1047_s13 = int_to_ptr.vmem [resolvable:$true] %s1046_s13 }
  0x1c   :  { %v1756_v30 = vld [vmem:[%s2255_s1 + $0x80] sm:$0xff]  ;;  %696 = vmatpush.bf16.msra.mxu2 %v1736_v26  ;;  %v1504_v36 = vld [vmem:[%s2254_s0 + $0x28] sm:$0xf0]  ;;  %v1787_v37 = vld [vmem:[%s2255_s1 + $0x1b8] sm:$0xff] }
  0x1d   :  { %v1059_v32 = vld [vmem:[%s2254_s0] sm:$0xf]  ;;  %v1503_v33 = vld [vmem:[%s2254_s0 + $0x20] sm:$0xf0]  ;;  %710 = vmatpush.bf16.msra.mxu3 %v1741_v27  ;;  %v1061_v39 = vld [vmem:[%s2254_s0 + $0x24] sm:$0xf0]  ;;  %v1068_v43 = vor.u32 %v1504_v36, %v1067_v35 }
  0x1e   :  { %v1499_v38 = vld [vmem:[%s2254_s0 + $0x4] sm:$0xf]  ;;  %v1060_v41 = vor.u32 %v1503_v33, %v1059_v32  ;;  %669 = vmatpush.bf16.msra.mxu0 %v1746_v28  ;;  %v1805_v42 = vld [vmem:[%s2255_s1 + $0x1f8] sm:$0xff]  ;;  %v1500_v44 = vld [vmem:[%s2254_s0 + $0xc] sm:$0xf] }
  0x1f   :  { %v1798_v40 = vld [vmem:[%s2255_s1 + $0xc0] sm:$0xff]  ;;  %683 = vmatpush.bf16.msra.mxu1 %v1751_v29  ;;  %2276 = vst [vmem:[#allocation8_spill] sm:$0xff] %v1805_v42  ;;  %v1069_v45 = vld [vmem:[%s2254_s0 + $0x2c] sm:$0xf0]  ;;  %v1064_v47 = vor.u32 %v1499_v38, %v1061_v39  ;;  %v1843_v52 = vld [vmem:[%s2255_s1 + $0x128] sm:$0xff] }
  0x20   :  { %2275 = vst [vmem:[#allocation7_spill] sm:$0xff] %v1798_v40  ;;  %697 = vmatpush.bf16.msra.mxu2 %v1756_v30  ;;  %v1818_v46 = vld [vmem:[%s2255_s1 + $0x130] sm:$0xff]  ;;  %v1072_v50 = vor.u32 %v1500_v44, %v1069_v45  ;;  %v1850_v53 = vld [vmem:[%s2255_s1 + $0x168] sm:$0xff]  ;;  %v1867_v56 = vld [vmem:[%s2255_s1 + $0x120] sm:$0xff] }
  0x21   :  { %v1825_v48 = vld [vmem:[%s2255_s1 + $0x170] sm:$0xff]  ;;  %711 = vmatpush.bf16.msra.mxu3 %v1798_v40  ;;  %670 = vmatmul.bf16.vlgmr.msra.gmra.mxu0 %v1060_v41  ;;  %v1855_v54 = vld [vmem:[%s2255_s1 + $0x1a8] sm:$0xff]  ;;  %v1874_v57 = vld [vmem:[%s2255_s1 + $0x160] sm:$0xff] }
  0x22   :  { %718 = vmatpush.bf16.msrb.mxu0 %v1763_v31  ;;  %v1830_v49 = vld [vmem:[%s2255_s1 + $0x1b0] sm:$0xff]  ;;  %684 = vmatmul.bf16.vlgmr.msra.gmra.mxu1 %v1064_v47  ;;  %v1861_v55 = vld [vmem:[%s2255_s1 + $0x1e8] sm:$0xff]  ;;  %v1879_v58 = vld [vmem:[%s2255_s1 + $0x1a0] sm:$0xff] }
  0x23   :  { %732 = vmatpush.bf16.msrb.mxu1 %v1776_v34  ;;  %v1837_v51 = vld [vmem:[%s2255_s1 + $0x1f0] sm:$0xff]  ;;  %698 = vmatmul.bf16.vlgmr.msra.gmra.mxu2 %v1068_v43  ;;  %2278 = vst [vmem:[#allocation10_spill] sm:$0xff] %v1861_v55  ;;  %v1885_v59 = vld [vmem:[%s2255_s1 + $0x1e0] sm:$0xff]  ;;  %v1891_v60 = vld [vmem:[%s2255_s1 + $0x118] sm:$0xff] }
  0x24   :  { %746 = vmatpush.bf16.msrb.mxu2 %v1787_v37  ;;  %2277 = vst [vmem:[#allocation9_spill] sm:$0xff] %v1837_v51  ;;  %712 = vmatmul.bf16.vlgmr.msra.gmra.mxu3 %v1072_v50  ;;  %v1898_v61 = vld [vmem:[%s2255_s1 + $0x158] sm:$0xff]  ;;  %v1915_v32 = vld [vmem:[%s2255_s1 + $0x110] sm:$0xff]  ;;  %v1939_v38 = vld [vmem:[%s2255_s1 + $0x108] sm:$0xff] }
  0x25   :  { %760 = vmatpush.bf16.msrb.mxu3 %v1805_v42  ;;  %2279 = vst [vmem:[#allocation11_spill] sm:$0xff] %v1885_v59  ;;  %v1903_v62 = vld [vmem:[%s2255_s1 + $0x198] sm:$0xff]  ;;  %v1922_v33 = vld [vmem:[%s2255_s1 + $0x150] sm:$0xff]  ;;  %v1946_v39 = vld [vmem:[%s2255_s1 + $0x148] sm:$0xff] }
  0x26   :  { %719 = vmatpush.bf16.msrb.mxu0 %v1818_v46  ;;  %v1909_v63 = vld [vmem:[%s2255_s1 + $0x1d8] sm:$0xff]  ;;  %2281 = vst [vmem:[#allocation13_spill] sm:$0xff] %v1922_v33  ;;  %v1927_v35 = vld [vmem:[%s2255_s1 + $0x190] sm:$0xff]  ;;  %v1951_v41 = vld [vmem:[%s2255_s1 + $0x188] sm:$0xff] }
  0x27   :  { %733 = vmatpush.bf16.msrb.mxu1 %v1825_v48  ;;  %2280 = vst [vmem:[#allocation12_spill] sm:$0xff] %v1909_v63  ;;  %v1933_v36 = vld [vmem:[%s2255_s1 + $0x1d0] sm:$0xff]  ;;  %v1957_v43 = vld [vmem:[%s2255_s1 + $0x1c8] sm:$0xff]  ;;  %v1962_v44 = vld [vmem:[%s2255_s1 + $0x100] sm:$0xff] }
  0x28   :  { %747 = vmatpush.bf16.msrb.mxu2 %v1830_v49  ;;  %2282 = vst [vmem:[#allocation14_spill] sm:$0xff] %v1927_v35  ;;  %v1968_v45 = vld [vmem:[%s2255_s1 + $0x140] sm:$0xff]  ;;  %v1075_v50 = vld [vmem:[%s2254_s0 + $0x10] sm:$0xf]  ;;  %v1077_v42 = vld [vmem:[%s2254_s0 + $0x34] sm:$0xf0] }
  0x29   :  { %761 = vmatpush.bf16.msrb.mxu3 %v1837_v51  ;;  %2283 = vst [vmem:[#allocation15_spill] sm:$0xff] %v1933_v36  ;;  %v1973_v47 = vld [vmem:[%s2255_s1 + $0x180] sm:$0xff]  ;;  %v1501_v51 = vld [vmem:[%s2254_s0 + $0x14] sm:$0xf] }
  0x2a   :  { %720 = vmatpush.bf16.msrb.mxu0 %v1843_v52  ;;  %2284 = vst [vmem:[#allocation16_spill] sm:$0xff] %v1939_v38  ;;  %v2004_v40 = vld [vmem:[%s2255_s1 + $0x1c0] sm:$0xff] }
  0x2b   :  { %734 = vmatpush.bf16.msrb.mxu1 %v1850_v53  ;;  %2285 = vst [vmem:[#allocation17_spill] sm:$0xff] %v1946_v39 }
  0x2c   :  { %748 = vmatpush.bf16.msrb.mxu2 %v1855_v54  ;;  %2286 = vst [vmem:[#allocation18_spill] sm:$0xff] %v1951_v41 }
  0x2d   :  { %762 = vmatpush.bf16.msrb.mxu3 %v1861_v55  ;;  %2287 = vst [vmem:[#allocation19_spill] sm:$0xff] %v1957_v43  ;;  %v1992_v55 = vld [vmem:[%s2255_s1 + $0x238] sm:$0xff] }
  0x2e   :  { %721 = vmatpush.bf16.msrb.mxu0 %v1867_v56 }
  0x2f   :  { %735 = vmatpush.bf16.msrb.mxu1 %v1874_v57 }
  0x30   :  { %749 = vmatpush.bf16.msrb.mxu2 %v1879_v58 }
  0x31   :  { %763 = vmatpush.bf16.msrb.mxu3 %v1885_v59  ;;  %v1506_v59 = vld [vmem:[%s2254_s0 + $0x38] sm:$0xf0] }
  0x32   :  { %722 = vmatpush.bf16.msrb.mxu0 %v1891_v60 }
  0x33   :  { %736 = vmatpush.bf16.msrb.mxu1 %v1898_v61 }
  0x34   :  { %750 = vmatpush.bf16.msrb.mxu2 %v1903_v62 }
  0x35   :  { %764 = vmatpush.bf16.msrb.mxu3 %v1909_v63  ;;  %v1083_v63 = vld [vmem:[%s2254_s0 + $0x18] sm:$0xf] }
  0x36   :  { %723 = vmatpush.bf16.msrb.mxu0 %v1915_v32  ;;  %v1084_v27 = vor.u32 %v1506_v59, %v1083_v63  ;;  %v1425_v59 = vld [vmem:[%s2254_s0 + $0x68] sm:$0xf] }
  0x37   :  { %737 = vmatpush.bf16.msrb.mxu1 %v1922_v33  ;;  %v2020_v33 = vld [vmem:[%s2255_s1 + $0x230] sm:$0xff] }
  0x38   :  { %751 = vmatpush.bf16.msrb.mxu2 %v1927_v35 }
  0x39   :  { %765 = vmatpush.bf16.msrb.mxu3 %v1933_v36  ;;  %v1505_v36 = vld [vmem:[%s2254_s0 + $0x30] sm:$0xf0] }
  0x3a   :  { %724 = vmatpush.bf16.msrb.mxu0 %v1939_v38  ;;  %v1076_v38 = vor.u32 %v1505_v36, %v1075_v50  ;;  %v1547_v36 = vmov 0.0  }
  0x3b   :  { %738 = vmatpush.bf16.msrb.mxu1 %v1946_v39  ;;  %v1085_v39 = vld [vmem:[%s2254_s0 + $0x3c] sm:$0xf0]  ;;  %25 = vst [vmem:[#allocation2] sm:$0x3] %v1547_v36  ;;  %v1009_v36 = vld [vmem:[%s2257_s3 + $0x48] sm:$0xff] }
  0x3c   :  { %752 = vmatpush.bf16.msrb.mxu2 %v1951_v41  ;;  %v1502_v41 = vld [vmem:[%s2254_s0 + $0x1c] sm:$0xf] }
  0x3d   :  { %766 = vmatpush.bf16.msrb.mxu3 %v1957_v43  ;;  %v1080_v43 = vor.u32 %v1501_v51, %v1077_v42  ;;  %v1088_v35 = vor.u32 %v1502_v41, %v1085_v39  ;;  %v2294_v42 = vld [vmem:[#allocation7_spill] sm:$0xff]  ;;  %v2296_v51 = vld [vmem:[#allocation9_spill] sm:$0xff] }
  0x3e   :  { %725 = vmatpush.bf16.msrb.mxu0 %v1962_v44 }
  0x3f   :  { %739 = vmatpush.bf16.msrb.mxu1 %v1968_v45 }
  0x40   :  { %753 = vmatpush.bf16.msrb.mxu2 %v1973_v47 }
  0x41   :  { %767 = vmatpush.bf16.msrb.mxu3 %v2004_v40  ;;  %726 = vmatmul.bf16.vlgmr.msrb.gmra.mxu0 %v1076_v38  ;;  %v2194_v38 = vld [vmem:[%s2256_s2] ss:$0 sm:$0xff] }
  0x42   :  { %774 = vmatpush.bf16.msra.mxu0 %v1992_v55  ;;  %740 = vmatmul.bf16.vlgmr.msrb.gmra.mxu1 %v1080_v43 }
  0x43   :  { %857 = vmatpush.bf16.msra.mxu1 %v1582_v0  ;;  %754 = vmatmul.bf16.vlgmr.msrb.gmra.mxu2 %v1084_v27  ;;  %v2029_v0 = vld [vmem:[%s2255_s1 + $0x228] sm:$0xff]  ;;  %v1510_v27 = vld [vmem:[%s2254_s0 + $0x5c] sm:$0xf] }
  0x44   :  { %871 = vmatpush.bf16.msra.mxu2 %v1587_v1  ;;  %768 = vmatmul.bf16.vlgmr.msrb.gmra.mxu3 %v1088_v35  ;;  %v2038_v1 = vld [vmem:[%s2255_s1 + $0x220] sm:$0xff] }
  0x45   :  { %885 = vmatpush.bf16.msra.mxu3 %v1592_v2  ;;  %v2047_v2 = vld [vmem:[%s2255_s1 + $0x218] sm:$0xff] }
  0x46   :  { %775 = vmatpush.bf16.msra.mxu0 %v2020_v33 }
  0x47   :  { %858 = vmatpush.bf16.msra.mxu1 %v1604_v4  ;;  %v2056_v4 = vld [vmem:[%s2255_s1 + $0x210] sm:$0xff] }
  0x48   :  { %872 = vmatpush.bf16.msra.mxu2 %v1609_v5  ;;  %v2065_v5 = vld [vmem:[%s2255_s1 + $0x208] sm:$0xff] }
  0x49   :  { %886 = vmatpush.bf16.msra.mxu3 %v1616_v6  ;;  %v2074_v6 = vld [vmem:[%s2255_s1 + $0x200] sm:$0xff] }
  0x4a   :  { %776 = vmatpush.bf16.msra.mxu0 %v2029_v0 }
  0x4b   :  { %859 = vmatpush.bf16.msra.mxu1 %v1628_v8  ;;  %v1091_v8 = vld [vmem:[%s2254_s0 + $0x20] sm:$0xf] }
  0x4c   :  { %873 = vmatpush.bf16.msra.mxu2 %v1633_v9  ;;  %v1507_v9 = vld [vmem:[%s2254_s0 + $0x40] sm:$0xf0] }
  0x4d   :  { %887 = vmatpush.bf16.msra.mxu3 %v1640_v10  ;;  %v1508_v10 = vld [vmem:[%s2254_s0 + $0x4c] sm:$0xf] }
  0x4e   :  { %777 = vmatpush.bf16.msra.mxu0 %v2038_v1 }
  0x4f   :  { %860 = vmatpush.bf16.msra.mxu1 %v1652_v12  ;;  %v1395_v12 = vld [vmem:[%s2254_s0 + $0x6c] sm:$0xf0] }
  0x50   :  { %874 = vmatpush.bf16.msra.mxu2 %v1657_v13  ;;  %v1393_v13 = vld [vmem:[%s2254_s0 + $0x48] sm:$0xf] }
  0x51   :  { %888 = vmatpush.bf16.msra.mxu3 %v1664_v14  ;;  %v1512_v14 = vld [vmem:[%s2254_s0 + $0x68] sm:$0xf0] }
  0x52   :  { %778 = vmatpush.bf16.msra.mxu0 %v2047_v2 }
  0x53   :  { %861 = vmatpush.bf16.msra.mxu1 %v1676_v16  ;;  %v1092_v16 = vor.u32 %v1507_v9, %v1091_v8 }
  0x54   :  { %875 = vmatpush.bf16.msra.mxu2 %v1681_v17  ;;  %v1401_v17 = vld [vmem:[%s2254_s0 + $0x50] sm:$0xf] }
  0x55   :  { %889 = vmatpush.bf16.msra.mxu3 %v1688_v18  ;;  %v1513_v18 = vld [vmem:[%s2254_s0 + $0x70] sm:$0xf0] }
  0x56   :  { %779 = vmatpush.bf16.msra.mxu0 %v2056_v4 }
  0x57   :  { %862 = vmatpush.bf16.msra.mxu1 %v1700_v20  ;;  %v1398_v20 = vor.u32 %v1508_v10, %v1395_v12 }
  0x58   :  { %876 = vmatpush.bf16.msra.mxu2 %v1705_v21  ;;  %v1394_v21 = vor.u32 %v1512_v14, %v1393_v13 }
  0x59   :  { %890 = vmatpush.bf16.msra.mxu3 %v1712_v22  ;;  %v1402_v22 = vor.u32 %v1513_v18, %v1401_v17 }
  0x5a   :  { %780 = vmatpush.bf16.msra.mxu0 %v2065_v5 }
  0x5b   :  { %863 = vmatpush.bf16.msra.mxu1 %v1724_v24  ;;  %v1403_v24 = vld [vmem:[%s2254_s0 + $0x74] sm:$0xf0] }
  0x5c   :  { %877 = vmatpush.bf16.msra.mxu2 %v1729_v25  ;;  %v1514_v25 = vld [vmem:[%s2254_s0 + $0x78] sm:$0xf0] }
  0x5d   :  { %891 = vmatpush.bf16.msra.mxu3 %v1736_v26  ;;  %v2292_v26 = vld [vmem:[#allocation17_spill] sm:$0xff] }
  0x5e   :  { %781 = vmatpush.bf16.msra.mxu0 %v2074_v6 }
  0x5f   :  { %864 = vmatpush.bf16.msra.mxu1 %v1746_v28  ;;  %v1411_v28 = vld [vmem:[%s2254_s0 + $0x7c] sm:$0xf0] }
  0x60   :  { %878 = vmatpush.bf16.msra.mxu2 %v1751_v29  ;;  %v2293_v29 = vld [vmem:[#allocation18_spill] sm:$0xff] }
  0x61   :  { %892 = vmatpush.bf16.msra.mxu3 %v1756_v30  ;;  %782 = vmatmul.bf16.vlgmr.msra.gmra.mxu0 %v1092_v16  ;;  %v1417_v30 = vld [vmem:[%s2254_s0 + $0x60] sm:$0xf] }
  0x62   :  { %899 = vmatpush.bf16.msrb.mxu0 %v1597_v3  ;;  %865 = vmatmul.bf16.vlgmr.msra.gmra.mxu1 %v1394_v21  ;;  %v2288_v3 = vld [vmem:[#allocation13_spill] sm:$0xff] }
  0x63   :  { %913 = vmatpush.bf16.msrb.mxu1 %v1763_v31  ;;  %879 = vmatmul.bf16.vlgmr.msra.gmra.mxu2 %v1398_v20  ;;  %v1515_v31 = vld [vmem:[%s2254_s0 + $0x80] sm:$0xf0] }
  0x64   :  { %927 = vmatpush.bf16.msrb.mxu2 %v1776_v34  ;;  %893 = vmatmul.bf16.vlgmr.msra.gmra.mxu3 %v1402_v22 }
  0x65   :  { %941 = vmatpush.bf16.msrb.mxu3 %v1787_v37 }
  0x66   :  { %900 = vmatpush.bf16.msrb.mxu0 %v1621_v7  ;;  %v2289_v7 = vld [vmem:[#allocation14_spill] sm:$0xff] }
  0x67   :  { %914 = vmatpush.bf16.msrb.mxu1 %v1818_v46  ;;  %v1414_v46 = vor.u32 %v1510_v27, %v1411_v28 }
  0x68   :  { %928 = vmatpush.bf16.msrb.mxu2 %v1825_v48  ;;  %v2295_v48 = vld [vmem:[#allocation8_spill] sm:$0xff] }
  0x69   :  { %942 = vmatpush.bf16.msrb.mxu3 %v1830_v49  ;;  %v1418_v49 = vor.u32 %v1515_v31, %v1417_v30 }
  0x6a   :  { %901 = vmatpush.bf16.msrb.mxu0 %v1645_v11  ;;  %v1509_v11 = vld [vmem:[%s2254_s0 + $0x54] sm:$0xf] }
  0x6b   :  { %915 = vmatpush.bf16.msrb.mxu1 %v1843_v52  ;;  %v1406_v34 = vor.u32 %v1509_v11, %v1403_v24  ;;  %v2297_v52 = vld [vmem:[#allocation10_spill] sm:$0xff] }
  0x6c   :  { %929 = vmatpush.bf16.msrb.mxu2 %v1850_v53  ;;  %v2298_v53 = vld [vmem:[#allocation11_spill] sm:$0xff] }
  0x6d   :  { %943 = vmatpush.bf16.msrb.mxu3 %v1855_v54  ;;  %v2299_v54 = vld [vmem:[#allocation12_spill] sm:$0xff] }
  0x6e   :  { %902 = vmatpush.bf16.msrb.mxu0 %v1669_v15  ;;  %v2290_v15 = vld [vmem:[#allocation6_spill] sm:$0xff] }
  0x6f   :  { %916 = vmatpush.bf16.msrb.mxu1 %v1867_v56  ;;  %v2301_v56 = vld [vmem:[#allocation19_spill] sm:$0xff] }
  0x70   :  { %930 = vmatpush.bf16.msrb.mxu2 %v1874_v57  ;;  %v1511_v57 = vld [vmem:[%s2254_s0 + $0x64] sm:$0xf] }
  0x71   :  { %944 = vmatpush.bf16.msrb.mxu3 %v1879_v58  ;;  %v1419_v58 = vld [vmem:[%s2254_s0 + $0x84] sm:$0xf0] }
  0x72   :  { %903 = vmatpush.bf16.msrb.mxu0 %v1693_v19  ;;  %v2291_v19 = vld [vmem:[#allocation16_spill] sm:$0xff] }
  0x73   :  { %917 = vmatpush.bf16.msrb.mxu1 %v1891_v60  ;;  %v1516_v60 = vld [vmem:[%s2254_s0 + $0x88] sm:$0xf0] }
  0x74   :  { %931 = vmatpush.bf16.msrb.mxu2 %v1898_v61  ;;  %v1422_v61 = vor.u32 %v1511_v57, %v1419_v58  ;;  %v1013_v57 = vld [vmem:[%s2257_s3 + $0x68] sm:$0xff] }
  0x75   :  { %945 = vmatpush.bf16.msrb.mxu3 %v1903_v62  ;;  %v1426_v62 = vor.u32 %v1516_v60, %v1425_v59 }
  0x76   :  { %904 = vmatpush.bf16.msrb.mxu0 %v1717_v23  ;;  %v1409_v23 = vld [vmem:[%s2254_s0 + $0x58] sm:$0xf] }
  0x77   :  { %918 = vmatpush.bf16.msrb.mxu1 %v1915_v32  ;;  %v1410_v37 = vor.u32 %v1514_v25, %v1409_v23 }
  0x78   :  { %932 = vmatpush.bf16.msrb.mxu2 %v2288_v3 }
  0x79   :  { %946 = vmatpush.bf16.msrb.mxu3 %v2289_v7 }
  0x7a   :  { %905 = vmatpush.bf16.msrb.mxu0 %v2290_v15 }
  0x7b   :  { %919 = vmatpush.bf16.msrb.mxu1 %v2291_v19 }
  0x7c   :  { %933 = vmatpush.bf16.msrb.mxu2 %v2292_v26 }
  0x7d   :  { %947 = vmatpush.bf16.msrb.mxu3 %v2293_v29 }
  0x7e   :  { %906 = vmatpush.bf16.msrb.mxu0 %v2294_v42 }
  0x7f   :  { %920 = vmatpush.bf16.msrb.mxu1 %v1962_v44 }
  0x80   :  { %934 = vmatpush.bf16.msrb.mxu2 %v1968_v45 }
  0x81   :  { %948 = vmatpush.bf16.msrb.mxu3 %v1973_v47  ;;  %907 = vmatmul.bf16.vlgmr.msrb.gmra.mxu0 %v1406_v34 }
  0x82   :  { %955 = vmatpush.bf16.msra.mxu0 %v2295_v48  ;;  %921 = vmatmul.bf16.vlgmr.msrb.gmra.mxu1 %v1410_v37  ;;  %v797_v37 = vld [vmem:[#allocation2] sm:$0x1] }
  0x83   :  { %969 = vmatpush.bf16.msra.mxu1 %v1992_v55  ;;  %935 = vmatmul.bf16.vlgmr.msrb.gmra.mxu2 %v1414_v46  ;;  %v2300_v55 = vld [vmem:[#allocation15_spill] sm:$0xff] }
  0x84   :  { %949 = vmatmul.bf16.vlgmr.msrb.gmra.mxu3 %v1418_v49 }
  0x86   :  { %956 = vmatpush.bf16.msra.mxu0 %v2296_v51 }
  0x87   :  { %970 = vmatpush.bf16.msra.mxu1 %v2020_v33 }
  0x8a   :  { %957 = vmatpush.bf16.msra.mxu0 %v2297_v52  ;;  %v1015_v52 = vld [vmem:[%s2257_s3 + $0x78] sm:$0xff] }
  0x8b   :  { %971 = vmatpush.bf16.msra.mxu1 %v2029_v0  ;;  %1020 = vmatpush.msra.mxu2 %v1015_v52 }
  0x8e   :  { %958 = vmatpush.bf16.msra.mxu0 %v2298_v53 }
  0x8f   :  { %972 = vmatpush.bf16.msra.mxu1 %v2038_v1 }
  0x92   :  { %959 = vmatpush.bf16.msra.mxu0 %v2299_v54 }
  0x93   :  { %973 = vmatpush.bf16.msra.mxu1 %v2047_v2 }
  0x96   :  { %960 = vmatpush.bf16.msra.mxu0 %v2300_v55  ;;  %v1014_v55 = vld [vmem:[%s2257_s3 + $0x70] sm:$0xff] }
  0x97   :  { %974 = vmatpush.bf16.msra.mxu1 %v2056_v4  ;;  %1021 = vmatpush.msra.mxu2 %v1014_v55 }
  0x99   :  { %1022 = vmatpush.msra.mxu2 %v1013_v57 }
  0x9a   :  { %961 = vmatpush.bf16.msra.mxu0 %v2301_v56 }
  0x9b   :  { %975 = vmatpush.bf16.msra.mxu1 %v2065_v5 }
  0x9e   :  { %962 = vmatpush.bf16.msra.mxu0 %v2004_v40  ;;  %v671_v63 = vpop.f32.mrf.mxu0 }
  0x9f   :  { %976 = vmatpush.bf16.msra.mxu1 %v2074_v6  ;;  %v685_v32 = vpop.f32.mrf.mxu1  ;;  %v672_v41 = vadd.f32 %v2194_v38, %v671_v63 }
  0xa1   :  { %963 = vmatmul.bf16.vlgmr.msra.gmra.mxu0 %v1422_v61  ;;  %v686_v44 = vadd.f32 %v685_v32, %v672_v41  ;;  %v1012_v61 = vld [vmem:[%s2257_s3 + $0x60] sm:$0xff] }
  0xa2   :  { %977 = vmatmul.bf16.vlgmr.msra.gmra.mxu1 %v1426_v62  ;;  %1023 = vmatpush.msra.mxu2 %v1012_v61  ;;  %v1011_v62 = vld [vmem:[%s2257_s3 + $0x58] sm:$0xff] }
  0xa4   :  { %1024 = vmatpush.msra.mxu2 %v1011_v62 }
  0xa6   :  { %v699_v33 = vpop.f32.mrf.mxu2  ;;  %v673_v35 = vpop.f32.mrf.mxu0 }
  0xa7   :  { %v713_v39 = vpop.f32.mrf.mxu3  ;;  %v687_v40 = vpop.f32.mrf.mxu1  ;;  %v674_v47 = vadd.f32 %v2194_v38, %v673_v35  ;;  %v700_v0 = vadd.f32 %v699_v33, %v686_v44  ;;  %v1010_v33 = vld [vmem:[%s2257_s3 + $0x50] sm:$0xff] }
  0xa8   :  { %1025 = vmatpush.msra.mxu2 %v1010_v33 }
  0xa9   :  { %v688_v1 = vadd.f32 %v687_v40, %v674_v47  ;;  %v714_v4 = vadd.f32 %v713_v39, %v700_v0  ;;  %v1006_v0 = vld [vmem:[%s2257_s3 + $0x30] sm:$0xff] }
  0xaa   :  { %1026 = vmatpush.msra.mxu2 %v1009_v36 }
  0xae   :  { %v701_v43 = vpop.f32.mrf.mxu2 }
  0xaf   :  { %v715_v50 = vpop.f32.mrf.mxu3  ;;  %v702_v6 = vadd.f32 %v701_v43, %v688_v1  ;;  %v1008_v43 = vld [vmem:[%s2257_s3 + $0x40] sm:$0xff] }
  0xb0   :  { %1027 = vmatpush.msra.mxu2 %v1008_v43 }
  0xb1   :  { %v716_v12 = vadd.f32 %v715_v50, %v702_v6 }
  0xbe   :  { %v727_v45 = vpop.f32.mrf.mxu0 }
  0xbf   :  { %v741_v2 = vpop.f32.mrf.mxu1  ;;  %v728_v9 = vadd.f32 %v727_v45, %v714_v4  ;;  %v1007_v45 = vld [vmem:[%s2257_s3 + $0x38] sm:$0xff] }
  0xc0   :  { %1028 = vmatpush.msra.mxu2 %v1007_v45 }
  0xc1   :  { %v742_v13 = vadd.f32 %v741_v2, %v728_v9  ;;  %v1005_v2 = vld [vmem:[%s2257_s3 + $0x28] sm:$0xff]  ;;  %v1003_v9 = vld [vmem:[%s2257_s3 + $0x18] sm:$0xff] }
  0xc2   :  { %1029 = vmatpush.msra.mxu2 %v1006_v0 }
  0xc4   :  { %1030 = vmatpush.msra.mxu2 %v1005_v2 }
  0xc6   :  { %v755_v5 = vpop.f32.mrf.mxu2  ;;  %v729_v8 = vpop.f32.mrf.mxu0 }
  0xc7   :  { %v769_v10 = vpop.f32.mrf.mxu3  ;;  %v730_v14 = vadd.f32 %v729_v8, %v716_v12  ;;  %v743_v16 = vpop.f32.mrf.mxu1  ;;  %v756_v20 = vadd.f32 %v755_v5, %v742_v13  ;;  %v1004_v5 = vld [vmem:[%s2257_s3 + $0x20] sm:$0xff]  ;;  %v1002_v13 = vld [vmem:[%s2257_s3 + $0x10] sm:$0xff] }
  0xc8   :  { %1031 = vmatpush.msra.mxu2 %v1004_v5 }
  0xc9   :  { %v744_v21 = vadd.f32 %v743_v16, %v730_v14  ;;  %v770_v7 = vadd.f32 %v769_v10, %v756_v20 }
  0xca   :  { %1032 = vmatpush.msra.mxu2 %v1003_v9 }
  0xcc   :  { %1033 = vmatpush.msra.mxu2 %v1002_v13 }
  0xce   :  { %v757_v17 = vpop.f32.mrf.mxu2 }
  0xcf   :  { %v758_v22 = vadd.f32 %v757_v17, %v744_v21  ;;  %v771_v3 = vpop.f32.mrf.mxu3  ;;  %v1000_v21 = vld [vmem:[%s2257_s3] sm:$0xff] }
  0xd1   :  { %v772_v11 = vadd.f32 %v771_v3, %v758_v22 }
  0xde   :  { %v783_v18 = vpop.f32.mrf.mxu0 }
  0xdf   :  { %v784_v15 = vadd.f32 %v783_v18, %v770_v7  ;;  %v866_v31 = vpop.f32.mrf.mxu1  ;;  %v1001_v18 = vld [vmem:[%s2257_s3 + $0x8] sm:$0xff] }
  0xe0   :  { %v867_v53 = vadd.f32 %v2194_v38, %v866_v31  ;;  %1034 = vmatpush.msra.mxu2 %v1001_v18  ;;  %v992_v31 = vld [vmem:[#allocation2 + $0x1] sm:$0x1] }
  0xe1   :  { %v788_v23 = vmax.f32 %v784_v15, 0.0 }
  0xe2   :  { %1035 = vmatpush.msra.mxu2 %v1000_v21 }
  0xe6   :  { %v785_v19 = vpop.f32.mrf.mxu0  ;;  %v880_v48 = vpop.f32.mrf.mxu2 }
  0xe7   :  { %v786_v24 = vadd.f32 %v785_v19, %v772_v11  ;;  %v868_v49 = vpop.f32.mrf.mxu1  ;;  %v894_v51 = vpop.f32.mrf.mxu3  ;;  %v881_v58 = vadd.f32 %v880_v48, %v867_v53  ;;  %v1520_v48 = vld [vmem:[%s2258_s4] ss:$0 sm:$0xff] }
  0xe8   :  { %v869_v32 = vadd.f32 %v2194_v38, %v868_v49 }
  0xe9   :  { %v789_v25 = vmax.f32 %v786_v24, 0.0  ;;  %v895_v63 = vadd.f32 %v894_v51, %v881_v58 }
  0xeb   :  { %v790_v26 = vadd.f32 %v789_v25, %v788_v23 }
  0xed   :  { %v791_v27 = vrot.slane %v790_v26, 4 }
  0xee   :  { %v882_v54 = vpop.f32.mrf.mxu2 }
  0xef   :  { %v792_v28 = vadd.f32 %v791_v27, %v790_v26  ;;  %v896_v60 = vpop.f32.mrf.mxu3  ;;  %v883_v39 = vadd.f32 %v882_v54, %v869_v32 }
  0xf1   :  { %v793_v29 = vrot.slane %v792_v28, 2  ;;  %v897_v47 = vadd.f32 %v896_v60, %v883_v39 }
  0xf3   :  { %v794_v30 = vadd.f32 %v793_v29, %v792_v28 }
  0xf5   :  { %v795_v34 = vrot.slane %v794_v30, 1 }
  0xf7   :  { %v796_v42 = vadd.f32 %v795_v34, %v794_v30 }
  0xf9   :  { %v798_v46 = vadd.f32 %v797_v37, %v796_v42 }
  0xfb   :  { %799 = vst [vmem:[#allocation2] sm:$0x1] %v798_v46 }
  0xfe   :  { %v908_v56 = vpop.f32.mrf.mxu0 }
  0xff   :  { %v922_v59 = vpop.f32.mrf.mxu1  ;;  %v909_v41 = vadd.f32 %v908_v56, %v895_v63 }
 0x101   :  { %v923_v50 = vadd.f32 %v922_v59, %v909_v41 }
 0x106   :  { %v936_v35 = vpop.f32.mrf.mxu2  ;;  %v910_v40 = vpop.f32.mrf.mxu0 }
 0x107   :  { %v924_v38 = vpop.f32.mrf.mxu1  ;;  %v950_v44 = vpop.f32.mrf.mxu3  ;;  %v911_v1 = vadd.f32 %v910_v40, %v897_v47  ;;  %v937_v4 = vadd.f32 %v936_v35, %v923_v50 }
 0x109   :  { %v925_v10 = vadd.f32 %v924_v38, %v911_v1  ;;  %v951_v14 = vadd.f32 %v950_v44, %v937_v4 }
 0x10e   :  { %v938_v6 = vpop.f32.mrf.mxu2 }
 0x10f   :  { %v939_v16 = vadd.f32 %v938_v6, %v925_v10  ;;  %v952_v17 = vpop.f32.mrf.mxu3 }
 0x111   :  { %v953_v22 = vadd.f32 %v952_v17, %v939_v16 }
 0x11e   :  { %v964_v8 = vpop.f32.mrf.mxu0 }
 0x11f   :  { %v978_v12 = vpop.f32.mrf.mxu1  ;;  %v965_v20 = vadd.f32 %v964_v8, %v951_v14 }
 0x121   :  { %v979_v7 = vadd.f32 %v978_v12, %v965_v20 }
 0x123   :  { %v983_v24 = vmax.f32 %v979_v7, 0.0 }
 0x126   :  { %v966_v3 = vpop.f32.mrf.mxu0 }
 0x127   :  { %v967_v11 = vadd.f32 %v966_v3, %v953_v22  ;;  %v980_v15 = vpop.f32.mrf.mxu1 }
 0x129   :  { %v981_v19 = vadd.f32 %v980_v15, %v967_v11 }
 0x12b   :  { %v984_v23 = vmax.f32 %v981_v19, 0.0 }
 0x12d   :  { %v985_v25 = vadd.f32 %v984_v23, %v983_v24 }
 0x12f   :  { %v986_v26 = vrot.slane %v985_v25, 4 }
 0x131   :  { %v987_v27 = vadd.f32 %v986_v26, %v985_v25 }
 0x133   :  { %v988_v28 = vrot.slane %v987_v27, 2 }
 0x135   :  { %v989_v29 = vadd.f32 %v988_v28, %v987_v27 }
 0x137   :  { %v990_v30 = vrot.slane %v989_v29, 1 }
 0x139   :  { %v991_v34 = vadd.f32 %v990_v30, %v989_v29 }
 0x13b   :  { %v993_v37 = vadd.f32 %v992_v31, %v991_v34 }
 0x13d   :  { %994 = vst [vmem:[#allocation2 + $0x1] sm:$0x1] %v993_v37 }
 0x144   :  { %v998_v42 = vld [vmem:[#allocation2] sm:$0x3] }
 0x145   :  { %v999_v46 = vmul.f32 0.0625, %v998_v42 }
 0x147   :  { %1036 = vmatmul.f32.vlgmr.msra.gmra.mxu2 %v999_v46 }
 0x1ca   :  { %v1037_v49 = vpop.f32.mrf.mxu2 }
 0x1cb   :  { %v1038_v51 = vadd.f32 %v1520_v48, %v1037_v49 }
 0x1cd   :  { %1040 = vst [vmem:[#allocation3] sm:$0x3] %v1038_v51 }
 0x1ce   :  { %1051 = dma.vmem_to_hbm [thread:$0]  %s1047_s13, 32, %s1049_s16, [#allocation4]  }
 0x1cf   :  { %1545 = dma.done.wait [#allocation4], 32  }
 0x1d0   :  { %1546 = vsyncadd [#allocation4], 4294967264 }
 0x1d1   :  { %1056 = vsyncpa [#allocation4], 1 }

</bundles_post_ra>
